<compile_context>
chip_gen: v6e
topology: v6e:2x2x1
jax: 0.10.0
libtpu: 0.0.40
codegen_flags: <defaults>
</compile_context>

<pallas_src>
import functools
import math

import jax
import jax.numpy as jnp
from jax.experimental import pallas as pl
from jax.experimental.pallas import tpu as pltpu

_EPS = 1e-5                        # nn.InstanceNorm2d default eps
_SQRT_2_OVER_PI = 0.7978845608028654
_GELU_C = 0.044715
_VMEM_LIMIT_BYTES = 48 * 1024 * 1024   # < v7x's 64 MiB physical, > v5e default


# ----------------------------------------------------------------------------
# Mosaic-safe elementwise helpers
# ----------------------------------------------------------------------------
def _gelu(x):
    # tanh-form GELU: one EUP op per element.  Matches nn.GELU() to ~1e-3 abs.
    u = _SQRT_2_OVER_PI * (x + _GELU_C * x * x * x)
    return 0.5 * x * (1.0 + jnp.tanh(u))


def _softplus(x):
    # Numerically stable log(1 + exp(x)) (matches nn.Softplus(beta=1)).
    return jnp.maximum(x, 0.0) + jnp.log(1.0 + jnp.exp(-jnp.abs(x)))


# ----------------------------------------------------------------------------
# Pass 1: InstanceNorm statistics (per-batch, per-channel mean / rstd).
# ----------------------------------------------------------------------------
def _stats_kernel(x_ref, stats_ref, sum_acc, sq_acc, *, inv_n):
    j = pl.program_id(1)

    @pl.when(j == 0)
    def _():
        sum_acc[...] = jnp.zeros_like(sum_acc)
        sq_acc[...] = jnp.zeros_like(sq_acc)

    x = x_ref[0]                                          # (C, Nt) f32
    sum_acc[...] += jnp.sum(x, axis=1, keepdims=True)     # padded cols are 0
    sq_acc[...] += jnp.sum(x * x, axis=1, keepdims=True)

    @pl.when(j == pl.num_programs(1) - 1)
    def _():
        mean = sum_acc[...] * inv_n
        var = sq_acc[...] * inv_n - mean * mean           # biased variance
        rstd = jax.lax.rsqrt(var + _EPS)
        stats_ref[0] = jnp.concatenate([mean, rstd], axis=1)   # (C, 2)


# ----------------------------------------------------------------------------
# Pass 2: accumulate kv (C, C) and ksum (C, 1) over N tiles.
# ----------------------------------------------------------------------------
def _kv_kernel(x_ref, stats_ref, w1_ref, b1_ref, wk2_ref, bk2_ref,
               kv_ref, ksum_ref, kv_acc, ksum_acc,
               *, c, n_true, n_tile, inv_sqrt_c, masked):
    j = pl.program_id(1)
    bf16 = jnp.bfloat16

    @pl.when(j == 0)
    def _():
        kv_acc[...] = jnp.zeros_like(kv_acc)
        ksum_acc[...] = jnp.zeros_like(ksum_acc)

    x = x_ref[0]                                          # (C, Nt) f32
    stats = stats_ref[0]                                  # (C, 2)
    xn = ((x - stats[:, 0:1]) * stats[:, 1:2]).astype(bf16)

    # Fused [k1 | v] first-layer 1x1 conv + a single GELU sweep.
    h = _gelu(jnp.dot(w1_ref[...], xn, preferred_element_type=jnp.float32)
              + b1_ref[...])                              # (2C, Nt) f32
    v = h[c:]                                             # (C, Nt)
    k = _softplus(jnp.dot(wk2_ref[...], h[:c].astype(bf16),
                          preferred_element_type=jnp.float32)
                  + bk2_ref[...])                         # (C, Nt)

    if masked:  # zero the padded tail so kv / ksum only see real pixels
        col = jax.lax.broadcasted_iota(jnp.int32, (1, n_tile), 1) + j * n_tile
        k = jnp.where(col < n_true, k, 0.0)

    # kv_acc[d, c'] += sum_n v[d, n] * k[c', n]  — orientation chosen so the
    # second dot (pass 3) is a standard last-dim x first-dim contraction.
    kv_acc[...] += jax.lax.dot_general(
        v.astype(bf16), k.astype(bf16), (((1,), (1,)), ((), ())),
        preferred_element_type=jnp.float32)
    ksum_acc[...] += jnp.sum(k, axis=1, keepdims=True)    # lane reduce

    @pl.when(j == pl.num_programs(1) - 1)
    def _():
        # Fold 1/sqrt(C) into the small tensors instead of the (C, N) slabs.
        kv_ref[0] = kv_acc[...] * inv_sqrt_c
        ksum_ref[0] = ksum_acc[...] * inv_sqrt_c


# ----------------------------------------------------------------------------
# Pass 3: attention output, gating, output 1x1 conv, residual — per N tile.
# ----------------------------------------------------------------------------
def _out_kernel(x_ref, stats_ref, kv_ref, ksum_ref, w1_ref, b1_ref,
                wq2_ref, bq2_ref, wo_ref, bo_ref, out_ref, *, c, n_true):
    bf16 = jnp.bfloat16
    x = x_ref[0]                                          # (C, Nt) f32 (residual)
    stats = stats_ref[0]
    xn = ((x - stats[:, 0:1]) * stats[:, 1:2]).astype(bf16)

    # Fused [q1 | v | g] first-layer 1x1 conv + a single GELU sweep.
    h = _gelu(jnp.dot(w1_ref[...], xn, preferred_element_type=jnp.float32)
              + b1_ref[...])                              # (3C, Nt) f32
    q = _softplus(jnp.dot(wq2_ref[...], h[:c].astype(bf16),
                          preferred_element_type=jnp.float32)
                  + bq2_ref[...])                         # (C, Nt)
    v = h[c:2 * c]                                        # (C, Nt)
    g = h[2 * c:]                                         # (C, Nt)

    # attn[d, n] = sum_c kv[d, c] q[c, n]  (kv already includes 1/sqrt(C)).
    attn = jnp.dot(kv_ref[0].astype(bf16), q.astype(bf16),
                   preferred_element_type=jnp.float32)    # (C, Nt)

    # z denominator: broadcast-multiply + sublane reduce (ksum already /sqrt(C)).
    zden = jnp.sum(q * ksum_ref[0], axis=0, keepdims=True) + float(n_true)
    z = 1.0 / zden                                        # full precision: scales output

    out = (attn + v) * z * g                              # (C, Nt)

    y = jnp.dot(wo_ref[...], out.astype(bf16),
                preferred_element_type=jnp.float32) + bo_ref[...]
    out_ref[0] = y + x                                    # residual (pre-norm x)


# ----------------------------------------------------------------------------
# Parameter packing (weights bf16 for the MXU, biases f32 as (K, 1) columns).
# ----------------------------------------------------------------------------
def _pack_params(params):
    bf16 = jnp.bfloat16
    w1_kv = jnp.concatenate([params["wk1"], params["wv"]], axis=0).astype(bf16)
    b1_kv = jnp.concatenate([params["bk1"], params["bv"]], axis=0)[:, None]
    wk2 = params["wk2"].astype(bf16)
    bk2 = params["bk2"][:, None]
    w1_qvg = jnp.concatenate([params["wq1"], params["wv"], params["wg"]],
                             axis=0).astype(bf16)
    b1_qvg = jnp.concatenate([params["bq1"], params["bv"], params["bg"]],
                             axis=0)[:, None]
    wq2 = params["wq2"].astype(bf16)
    bq2 = params["bq2"][:, None]
    wo = params["wo"].astype(bf16)
    bo = params["bo"][:, None]
    return w1_kv, b1_kv, wk2, bk2, w1_qvg, b1_qvg, wq2, bq2, wo, bo


def _pick_n_tile(C, n_pad):
    # Heaviest pass keeps ~56-60 bytes of live slab + double-buffered in/out
    # block per (channel, column); size the tile from a 24 MiB budget so all
    # generations (incl. v7x's 64 MiB physical VMEM) have headroom.
    budget = 24 * 1024 * 1024
    nt = budget // (60 * C)
    nt = max(128, min(nt, 4096, n_pad))
    return max((nt // 128) * 128, 128)


# ----------------------------------------------------------------------------
# Wrapper: 3 streaming pallas_calls over (B, C, N_padded).
# ----------------------------------------------------------------------------
def gattn_forward(x_nchw, params, *, n_tile=None):
    B, C, H, W = x_nchw.shape
    if C % 8 != 0:
        raise ValueError("GAttn Pallas kernel requires C to be a multiple of 8")
    N = H * W
    n_pad = pl.cdiv(N, 128) * 128                 # lane-dense output stores
    if n_tile is None:
        n_tile = _pick_n_tile(C, n_pad)
    n_tile = min(max((n_tile // 128) * 128, 128), n_pad)
    n_pad = pl.cdiv(n_pad, n_tile) * n_tile
    nt_steps = n_pad // n_tile
    masked = (n_pad != N)

    x_bcn = x_nchw.reshape(B, C, N)               # pure reshape, no HBM transpose
    if masked:
        x_bcn = jnp.pad(x_bcn, ((0, 0), (0, 0), (0, n_pad - N)))

    (w1_kv, b1_kv, wk2, bk2, w1_qvg, b1_qvg, wq2, bq2, wo, bo) = _pack_params(params)

    x_spec = pl.BlockSpec((1, C, n_tile), lambda b, j: (b, 0, j))
    per_b = lambda shape: pl.BlockSpec(shape, lambda b, j: (b, 0, 0))
    const = lambda shape: pl.BlockSpec(shape, lambda b, j: (0, 0))

    cp_seq = pltpu.CompilerParams(
        dimension_semantics=("parallel", "arbitrary"),
        vmem_limit_bytes=_VMEM_LIMIT_BYTES)
    cp_par = pltpu.CompilerParams(
        dimension_semantics=("parallel", "parallel"),
        vmem_limit_bytes=_VMEM_LIMIT_BYTES)

    # ---- pass 1: InstanceNorm statistics ------------------------------------
    stats = pl.pallas_call(
        functools.partial(_stats_kernel, inv_n=1.0 / N),
        out_shape=jax.ShapeDtypeStruct((B, C, 2), jnp.float32),
        grid=(B, nt_steps),
        in_specs=[x_spec],
        out_specs=per_b((1, C, 2)),
        scratch_shapes=[pltpu.VMEM((C, 1), jnp.float32),
                        pltpu.VMEM((C, 1), jnp.float32)],
        compiler_params=cp_seq,
    )(x_bcn)

    # ---- pass 2: accumulate kv / ksum over N tiles ---------------------------
    kv, ksum = pl.pallas_call(
        functools.partial(_kv_kernel, c=C, n_true=N, n_tile=n_tile,
                          inv_sqrt_c=1.0 / math.sqrt(C), masked=masked),
        out_shape=(jax.ShapeDtypeStruct((B, C, C), jnp.float32),
                   jax.ShapeDtypeStruct((B, C, 1), jnp.float32)),
        grid=(B, nt_steps),
        in_specs=[x_spec, per_b((1, C, 2)),
                  const((2 * C, C)), const((2 * C, 1)),
                  const((C, C)), const((C, 1))],
        out_specs=(per_b((1, C, C)), per_b((1, C, 1))),
        scratch_shapes=[pltpu.VMEM((C, C), jnp.float32),
                        pltpu.VMEM((C, 1), jnp.float32)],
        compiler_params=cp_seq,
    )(x_bcn, stats, w1_kv, b1_kv, wk2, bk2)

    # ---- pass 3: q@kv, z, gating, output conv, residual ----------------------
    out_bcn = pl.pallas_call(
        functools.partial(_out_kernel, c=C, n_true=N),
        out_shape=jax.ShapeDtypeStruct((B, C, n_pad), jnp.float32),
        grid=(B, nt_steps),
        in_specs=[x_spec, per_b((1, C, 2)), per_b((1, C, C)), per_b((1, C, 1)),
                  const((3 * C, C)), const((3 * C, 1)),
                  const((C, C)), const((C, 1)),
                  const((C, C)), const((C, 1))],
        out_specs=pl.BlockSpec((1, C, n_tile), lambda b, j: (b, 0, j)),
        compiler_params=cp_par,
    )(x_bcn, stats, kv, ksum, w1_qvg, b1_qvg, wq2, bq2, wo, bo)

    return out_bcn[:, :, :N].reshape(B, C, H, W)


# ----------------------------------------------------------------------------
# Deterministic parameter init (torch conv orientation: weight[out, in], bias[out]).
# ----------------------------------------------------------------------------
_WNAMES = ["wq1", "wk1", "wv", "wg", "wq2", "wk2", "wo"]
_BNAMES = ["bq1", "bk1", "bv", "bg", "bq2", "bk2", "bo"]


def init_params(key, C):
    bound = 1.0 / math.sqrt(C)        # PyTorch conv default init bound (k=1)
    keys = jax.random.split(key, 2 * len(_WNAMES))
    params = {}
    for i, (wn, bn) in enumerate(zip(_WNAMES, _BNAMES)):
        params[wn] = jax.random.uniform(keys[2 * i], (C, C), jnp.float32, -bound, bound)
        params[bn] = jax.random.uniform(keys[2 * i + 1], (C,), jnp.float32, -bound, bound)
    return params


# ----------------------------------------------------------------------------
# Pure-JAX reference (mirrors the PyTorch forward exactly) for validation.
# ----------------------------------------------------------------------------
def gattn_reference(x, params):
    B, C, H, W = x.shape
    N = H * W
    residual = x
    mean = x.mean(axis=(2, 3), keepdims=True)
    var = x.var(axis=(2, 3), keepdims=True)
    xn = (x - mean) / jnp.sqrt(var + _EPS)
    xf = xn.reshape(B, C, N)                                  # (B, C, N)

    def conv1x1(h, w, b):                                     # w: (C_out, C_in)
        return jnp.einsum('oc,bcn->bon', w, h) + b[None, :, None]

    gelu = lambda t: jax.nn.gelu(t, approximate=False)
    sp = jax.nn.softplus
    q = sp(conv1x1(gelu(conv1x1(xf, params["wq1"], params["bq1"])),
                   params["wq2"], params["bq2"]))             # (B, C, N)
    k = sp(conv1x1(gelu(conv1x1(xf, params["wk1"], params["bk1"])),
                   params["wk2"], params["bk2"]))             # (B, C, N)
    v = gelu(conv1x1(xf, params["wv"], params["bv"]))         # (B, C, N)
    g = gelu(conv1x1(xf, params["wg"], params["bg"]))         # (B, C, N)

    q_t = jnp.transpose(q, (0, 2, 1))                         # (B, N, C)
    v_t = jnp.transpose(v, (0, 2, 1))                         # (B, N, C)
    kv = jnp.einsum('bcn,bnd->bcd', k, v_t)
    z = jnp.einsum('bnc,bc->bn', q_t, k.sum(axis=-1)) / math.sqrt(C)
    z = 1.0 / (z + N)
    out = jnp.einsum('bnc,bcd->bnd', q_t, kv) / math.sqrt(C)
    out = out + v_t
    out = out * z[:, :, None]
    out = jnp.transpose(out, (0, 2, 1)).reshape(B, C, H, W)
    out = out * g.reshape(B, C, H, W)
    out = jnp.einsum('oc,bchw->bohw', params["wo"], out) + params["bo"][None, :, None, None]
    return out + residual


if __name__ == "__main__":
    key = jax.random.PRNGKey(0)
    kx, kp, kx2 = jax.random.split(key, 3)

    # Demo shape: B=2, C=32, 16x16 -> N=256 (two 128-wide N tiles, exercises
    # the tiled kv/ksum accumulation and the multi-pass structure).
    B, C, H, W = 2, 32, 16, 16
    x = jax.random.normal(kx, (B, C, H, W), dtype=jnp.float32)
    params = init_params(kp, C)

    out = jax.block_until_ready(gattn_forward(x, params, n_tile=128))
    ref = gattn_reference(x, params)
    assert out.shape == (B, C, H, W)
    err = float(jnp.max(jnp.abs(out - ref)))
    assert jnp.allclose(out, ref, atol=2e-2, rtol=2e-2), f"max abs err = {err}"

    # Non-128-multiple spatial size exercises the padded / masked-tail path.
    H2, W2 = 10, 10
    x2 = jax.random.normal(kx2, (B, C, H2, W2), dtype=jnp.float32)
    out2 = jax.block_until_ready(gattn_forward(x2, params))
    ref2 = gattn_reference(x2, params)
    err2 = float(jnp.max(jnp.abs(out2 - ref2)))
    assert jnp.allclose(out2, ref2, atol=2e-2, rtol=2e-2), f"max abs err = {err2}"

    print("KERNEL_OK")
</pallas_src>

<mosaic_0001>
module attributes {stable_mosaic.version = 11 : i64} {
  func.func @_stats_kernel(%arg0: i32, %arg1: i32, %arg2: memref<1x32x128xf32, #tpu.memory_space<vmem>>, %arg3: memref<1x32x2xf32, #tpu.memory_space<vmem>>, %arg4: memref<32x1xf32, #tpu.memory_space<vmem>>, %arg5: memref<32x1xf32, #tpu.memory_space<vmem>>) attributes {dimension_semantics = [#tpu.dimension_semantics<parallel>, #tpu.dimension_semantics<arbitrary>], iteration_bounds = array<i64: 2, 2>, scalar_prefetch = 0 : i64, scratch_operands = 2 : i64, tpu.core_type = #tpu.core_type<tc>, window_params = [{transform_indices = @transform_0, window_bounds = array<i64: 1, 32, 128>}, {transform_indices = @transform_1, window_bounds = array<i64: 1, 32, 2>}]} {
    %c0_i32 = arith.constant 0 : i32
    %0 = arith.cmpi eq, %arg1, %c0_i32 : i32
    %1 = arith.extui %0 : i1 to i32
    %c0_i32_0 = arith.constant 0 : i32
    %2 = arith.cmpi ne, %1, %c0_i32_0 : i32
    scf.if %2 {
      %cst_13 = arith.constant 0.000000e+00 : f32
      %19 = vector.broadcast %cst_13 : f32 to vector<32x1xf32>
      %c0_14 = arith.constant 0 : index
      %c0_15 = arith.constant 0 : index
      %20 = vector.load %arg4[%c0_14, %c0_15] : memref<32x1xf32, #tpu.memory_space<vmem>>, vector<32x1xf32>
      tpu.vector_store %arg4[%c0_14, %c0_15], %19 {strides = array<i32>} : memref<32x1xf32, #tpu.memory_space<vmem>>, vector<32x1xf32>,
      %cst_16 = arith.constant 0.000000e+00 : f32
      %21 = vector.broadcast %cst_16 : f32 to vector<32x1xf32>
      %c0_17 = arith.constant 0 : index
      %c0_18 = arith.constant 0 : index
      %22 = vector.load %arg5[%c0_17, %c0_18] : memref<32x1xf32, #tpu.memory_space<vmem>>, vector<32x1xf32>
      tpu.vector_store %arg5[%c0_17, %c0_18], %21 {strides = array<i32>} : memref<32x1xf32, #tpu.memory_space<vmem>>, vector<32x1xf32>,
    } else {
    }
    %c0 = arith.constant 0 : index
    %c0_1 = arith.constant 0 : index
    %c0_2 = arith.constant 0 : index
    %3 = vector.load %arg2[%c0, %c0_1, %c0_2] : memref<1x32x128xf32, #tpu.memory_space<vmem>>, vector<1x32x128xf32>
    %4 = vector.shape_cast %3 : vector<1x32x128xf32> to vector<32x128xf32>
    %c0_3 = arith.constant 0 : index
    %c0_4 = arith.constant 0 : index
    %5 = vector.load %arg4[%c0_3, %c0_4] : memref<32x1xf32, #tpu.memory_space<vmem>>, vector<32x1xf32>
    %cst = arith.constant dense<0.000000e+00> : vector<32xf32>
    %6 = vector.multi_reduction <add>, %4, %cst [1] : vector<32x128xf32> to vector<32xf32>
    %7 = vector.shape_cast %6 : vector<32xf32> to vector<32x1xf32>
    %8 = arith.addf %5, %7 : vector<32x1xf32>
    %c0_5 = arith.constant 0 : index
    %c0_6 = arith.constant 0 : index
    %9 = vector.load %arg4[%c0_5, %c0_6] : memref<32x1xf32, #tpu.memory_space<vmem>>, vector<32x1xf32>
    tpu.vector_store %arg4[%c0_5, %c0_6], %8 {strides = array<i32>} : memref<32x1xf32, #tpu.memory_space<vmem>>, vector<32x1xf32>,
    %c0_7 = arith.constant 0 : index
    %c0_8 = arith.constant 0 : index
    %10 = vector.load %arg5[%c0_7, %c0_8] : memref<32x1xf32, #tpu.memory_space<vmem>>, vector<32x1xf32>
    %11 = arith.mulf %4, %4 : vector<32x128xf32>
    %cst_9 = arith.constant dense<0.000000e+00> : vector<32xf32>
    %12 = vector.multi_reduction <add>, %11, %cst_9 [1] : vector<32x128xf32> to vector<32xf32>
    %13 = vector.shape_cast %12 : vector<32xf32> to vector<32x1xf32>
    %14 = arith.addf %10, %13 : vector<32x1xf32>
    %c0_10 = arith.constant 0 : index
    %c0_11 = arith.constant 0 : index
    %15 = vector.load %arg5[%c0_10, %c0_11] : memref<32x1xf32, #tpu.memory_space<vmem>>, vector<32x1xf32>
    tpu.vector_store %arg5[%c0_10, %c0_11], %14 {strides = array<i32>} : memref<32x1xf32, #tpu.memory_space<vmem>>, vector<32x1xf32>,
    %c1_i32 = arith.constant 1 : i32
    %16 = arith.cmpi eq, %arg1, %c1_i32 : i32
    %17 = arith.extui %16 : i1 to i32
    %c0_i32_12 = arith.constant 0 : i32
    %18 = arith.cmpi ne, %17, %c0_i32_12 : i32
    scf.if %18 {
      %c0_13 = arith.constant 0 : index
      %c0_14 = arith.constant 0 : index
      %19 = vector.load %arg4[%c0_13, %c0_14] : memref<32x1xf32, #tpu.memory_space<vmem>>, vector<32x1xf32>
      %cst_15 = arith.constant 3.906250e-03 : f32
      %20 = vector.broadcast %cst_15 : f32 to vector<32x1xf32>
      %21 = arith.mulf %19, %20 : vector<32x1xf32>
      %c0_16 = arith.constant 0 : index
      %c0_17 = arith.constant 0 : index
      %22 = vector.load %arg5[%c0_16, %c0_17] : memref<32x1xf32, #tpu.memory_space<vmem>>, vector<32x1xf32>
      %cst_18 = arith.constant 3.906250e-03 : f32
      %23 = vector.broadcast %cst_18 : f32 to vector<32x1xf32>
      %24 = arith.mulf %22, %23 : vector<32x1xf32>
      %25 = arith.mulf %21, %21 : vector<32x1xf32>
      %26 = arith.subf %24, %25 : vector<32x1xf32>
      %cst_19 = arith.constant 9.99999974E-6 : f32
      %27 = vector.broadcast %cst_19 : f32 to vector<32x1xf32>
      %28 = arith.addf %26, %27 : vector<32x1xf32>
      %29 = math.rsqrt %28 : vector<32x1xf32>
      %30 = tpu.concatenate %21, %29 in 1 : vector<32x1xf32>, vector<32x1xf32> -> vector<32x2xf32>
      %c0_20 = arith.constant 0 : index
      %c0_21 = arith.constant 0 : index
      %c0_22 = arith.constant 0 : index
      %31 = vector.load %arg3[%c0_20, %c0_21, %c0_22] : memref<1x32x2xf32, #tpu.memory_space<vmem>>, vector<1x32x2xf32>
      %32 = vector.shape_cast %31 : vector<1x32x2xf32> to vector<32x2xf32>
      %33 = vector.shape_cast %30 : vector<32x2xf32> to vector<1x32x2xf32>
      tpu.vector_store %arg3[%c0_20, %c0_21, %c0_22], %33 {strides = array<i32>} : memref<1x32x2xf32, #tpu.memory_space<vmem>>, vector<1x32x2xf32>,
    } else {
    }
    return
  }
  func.func @transform_0(%arg0: i32, %arg1: i32) -> (i32, i32, i32) {
    %c0_i32 = arith.constant 0 : i32
    %c0_i32_0 = arith.constant 0 : i32
    return %arg0, %c0_i32, %arg1 : i32, i32, i32
  }
  func.func @transform_1(%arg0: i32, %arg1: i32) -> (i32, i32, i32) {
    %c0_i32 = arith.constant 0 : i32
    %c0_i32_0 = arith.constant 0 : i32
    %c0_i32_1 = arith.constant 0 : i32
    return %arg0, %c0_i32, %c0_i32_0 : i32, i32, i32
  }
}

</mosaic_0001>

<bundles_post_ra>
// kernel: tpu_custom_call.1
= control target key start
LH: loop header
LB: loop body
LE: loop exit
PB: predicated region body
PF: predicated region fallthrough
CT: control target
= control target key end

     0   :  { %6 = vsyncpa [#allocation5], 0  ;;  %s710_s0 = inlined_call_operand.hbm [shape: f32[2,32,256], index: 0, kind: input, shape index: {}]   ;;  %s711_s1 = inlined_call_operand.vmem [shape: f32[2,32,2], index: 1, kind: output, shape index: {}]  }
   0x1   :  { %8 = vsyncpa [#allocation5 + $0x1], 0  ;;  %s567_s6 = smov 0   ;;  %s569_s7 = smov 0  }
   0x2   :  { %s571_s8 = smov 0   ;;  %s573_s9 = smov 0  }
   0x3   :  { %s575_s10 = smov 0   ;;  %s577_s11 = smov 0  }
   0x4   :  { %s579_s12 = smov 0   ;;  %s581_s13 = smov 0  }
   0x5 LB: > { %s355_s14 = sadd.s32 4294967295, %s549_s13   ;;  %s23_s15 = sadd.s32 1, %s541_s11  ;;  %s549_s13 = sphi %s581_s13, %s14_s13   ;;  %s545_s12 = sphi %s579_s12, %s721_s12   ;;  %s541_s11 = sphi %s577_s11, %s720_s11   ;;  %s537_s10 = sphi %s575_s10, %s719_s10   ;;  %s533_s9 = sphi %s573_s9, %s718_s9   ;;  %s529_s8 = sphi %s571_s8, %s717_s8   ;;  %s525_s7 = sphi %s569_s7, %s716_s7   ;;  %s521_s6 = sphi %s567_s6, %s715_s6  }
   0x6   : > { %p24_p0 = scmp.ge.s32.totalorder %s23_s15, 2  ;;  %s26_s16 = sadd.s32 1, %s545_s12 }
   0x7   : > { %s35_s17 = sadd.s32 1, %s529_s8  ;;  %p42_p1 = scmp.ne.s32.totalorder %s529_s8, %s525_s7 }
   0x8   : > { %s723_s15 = smov (%p24_p0, %s23_s15), 0  ;;  %s725_s16 = smov (!%p24_p0, %s26_s16), %s545_s12 }
   0x9   : > { %s31_s18 = ssub.s32 %s541_s11, %s723_s15  ;;  %p43_p2 = scmp.eq.s32.totalorder %s549_s13, 0 }
   0xa   : > { %p28_p3 = scmp.ge.s32.totalorder %s725_s16, 2  ;;  %p48_p4 = scmp.ne.s32.totalorder %s525_s7, %s521_s6 }
   0xb   : > { %p618_p5 = por %p43_p2, %p42_p1  ;;  %p49_p6 = scmp.eq.s32.totalorder %s355_s14, 0 }
   0xc   : > { %s727_s16 = smov (%p28_p3, %s725_s16), 0  ;;  %p377_p8 = scmp.lt.s32.totalorder %s549_s13, 4 }
   0xd   : > { %p624_p7 = por %p49_p6, %p48_p4  ;;  %s30_s21 = ssub.s32 %s545_s12, %s727_s16 }
   0xe   : > { %s32_s22 = sor.u32 %s31_s18, %s30_s21  ;;  %s98_s23 = sand.u32 1, %s529_s8  }
   0xf   : > { %p33_p9 = scmp.eq.s32.totalorder %s32_s22, 0  ;;  %s359_s24 = sshll.u32 %s98_s23, 5 }
  0x10   : > { %s360_s25 = sshll.u32 %s545_s12, 3  ;;  %s102_s29 = scalar_lea.vmem [#allocation4], %s359_s24 }
  0x11   : > { %s634_s26 = scalar_select %p33_p9, %s529_s8, %s35_s17  }
  0x12   : > { %s107_s27 = sadd.s32 %s541_s11, %s360_s25  ;;  %s110_s30 = sshll.u32 %s102_s29, 4  ;;  %s111_s30 = int_to_ptr.vmem [resolvable:$true] %s110_s30 }
  0x13   : > { %s361_s28 = sshll.u32 %s107_s27, 7  ;;  %p644_p10 = pnand %p377_p8, %p618_p5 }
  0x14   : > { %s109_s4 = scalar_lea.hbm %s710_s0, %s361_s28  ;;  %p362_p11 = scmp.ge.s32.totalorder %s549_s13, 1 }
  0x15   : > { %s99_s6 = scalar_lea.sflag [#allocation5], %s98_s23  ;;  %p457_p12 = pneg %p644_p10 }
  0x16   : > { %s468_s14 = scalar_lea.vmem %s111_s30, 512  ;;  %s551_s17 = smov [#allocation4]  }
  0x17   : > { %p469_p13 = scmp.ne.s32.totalorder %s111_s30, %s468_s14  ;;  %s473_s18 = sshll.u32 %s551_s17, 4  ;;  %s474_s18 = int_to_ptr.vmem [resolvable:$false] %s473_s18 }
  0x18   : > { %s475_s21 = scalar_lea.vmem %s474_s18, 1024  ;;  %p476_p2 = scmp.lt.s32.totalorder %s111_s30, %s474_s18 }
  0x19   : > { %p471_p0 = pnand %p469_p13, %p457_p12  ;;  %p477_p3 = scmp.lt.s32.totalorder %s475_s21, %s468_s14 }
  0x1b   : > { %p472_p1 = pneg %p471_p0  ;;  %p478_p4 = por %p477_p3, %p476_p2 }
  0x1d   : > { %p479_p5 = pnand %p478_p4, %p472_p1 }
  0x1f   : > { %482 = shalt.err (!%p479_p5)
}
  0x20   : > { %s552_s19 = smov 256   ;;  %s553_s22 = smov 128  }
  0x21   : > { %s554_s23 = smov 8   ;;  %p118_p6 = scmp.lt.s32.totalorder %s549_s13, 5 }
  0x22   : > { %376 = dma.hbm_to_vmem [thread:$0]  (!%p644_p10), %s109_s4, 512, %s111_s30, %s99_s6, %s552_s19, %s553_s22, %s554_s23  }
  0x23   : > { %p119_p8 = pnand %p362_p11, %p118_p6 }
  0x24   : > { %s124_s24 = sand.u32 (!%p119_p8), 1, %s525_s7  }
  0x25   : > { %122 = sbr.rel (%p119_p8) target bundleno = 358 (0x166), region = 24  ;;  %s363_s25 = sshll.u32 (!%p119_p8), %s124_s24, 5 }
  0x26   : > { %s125_s27 = scalar_lea.sflag (!%p119_p8), [#allocation5], %s124_s24  ;;  %s128_s28 = scalar_lea.vmem (!%p119_p8), [#allocation4], %s363_s25 }
  0x2a   : > { %516 = dma.done.wait (%p624_p7), %s125_s27, 512  }
  0x2b   : > { %518 = vsyncadd (%p624_p7), %s125_s27, 4294966784  ;;  %p147_p9 = scmp.lt.s32.totalorder %s537_s10, 1  ;;  %p366_p10 = scmp.ne.s32.totalorder %s533_s9, 0 }
  0x2d   : > { %s729_s10 = smov (!%p147_p9, %s537_s10), 1  ;;  %155 = sbr.rel (%p366_p10) target bundleno = 55 (0x37), region = 32 }
  0x2e   : > { %s370_s29 = sshll.u32 %s729_s10, 5 }
  0x2f   : > { %s666_s3 = scalar_lea.vmem %s711_s1, %s370_s29 }
  0x32   : > { %vm156_vm0 = vcmask 7168   ;;  %v555_v0 = vmov 0.0  }
  0x33   : > { %157 = vst.msk [vmem:[#allocation2] sm:$0xff] %vm156_vm0, %v555_v0  ;;  %158 = vst.msk [vmem:[#allocation2 + $0x8] sm:$0xff] %vm156_vm0, %v555_v0 }
  0x34   : > { %159 = vst.msk [vmem:[#allocation2 + $0x10] sm:$0xff] %vm156_vm0, %v555_v0  ;;  %160 = vst.msk [vmem:[#allocation2 + $0x18] sm:$0xff] %vm156_vm0, %v555_v0 }
  0x35   : > { %161 = vst.msk [vmem:[#allocation3] sm:$0xff] %vm156_vm0, %v555_v0  ;;  %162 = vst.msk [vmem:[#allocation3 + $0x8] sm:$0xff] %vm156_vm0, %v555_v0 }
  0x36   : > { %163 = vst.msk [vmem:[#allocation3 + $0x10] sm:$0xff] %vm156_vm0, %v555_v0  ;;  %164 = vst.msk [vmem:[#allocation3 + $0x18] sm:$0xff] %vm156_vm0, %v555_v0 }
  0x37 PF: > { %v167_v1 = vld [vmem:[%s128_s28 + $0x10] sm:$0xff]  ;;  %v165_v2 = vld [vmem:[%s128_s28] sm:$0xff]  ;;  %v168_v3 = vld [vmem:[%s128_s28 + $0x18] sm:$0xff]  ;;  %vm185_vm1 = vcmask 7168   ;;  %p367_p7 = scmp.ne.s32.totalorder %s533_s9, 1 }
  0x38   : > { %177 = vadd.xlane.f32.xlu1 %v167_v1  ;;  %173 = vadd.xlane.f32.xlu0 %v165_v2  ;;  %v166_v4 = vld [vmem:[%s128_s28 + $0x8] sm:$0xff]  ;;  %v194_v6 = vmul.f32 %v165_v2, %v165_v2  ;;  %v197_v7 = vmul.f32 %v168_v3, %v168_v3  ;;  %v196_v8 = vmul.f32 %v167_v1, %v167_v1  ;;  %s556_s9 = smov (!%p367_p7), 1  }
  0x39   : > { %v195_v5 = vmul.f32 %v166_v4, %v166_v4 }
  0x3a   : > { %v169_v10 = vld [vmem:[#allocation2] sm:$0xff]  ;;  %v170_v16 = vld [vmem:[#allocation2 + $0x8] sm:$0xff] }
  0x3b   : > { %v171_v9 = vld [vmem:[#allocation2 + $0x10] sm:$0xff]  ;;  %v172_v15 = vld [vmem:[#allocation2 + $0x18] sm:$0xff] }
  0x3c   : > { %179 = vadd.xlane.f32.xlu1 %v168_v3  ;;  %175 = vadd.xlane.f32.xlu0 %v166_v4  ;;  %v191_v21 = vld [vmem:[#allocation3 + $0x8] sm:$0xff]  ;;  %v190_v22 = vld [vmem:[#allocation3] sm:$0xff] }
  0x3d   : > { %v193_v27 = vld [vmem:[#allocation3 + $0x18] sm:$0xff]  ;;  %v192_v28 = vld [vmem:[#allocation3 + $0x10] sm:$0xff] }
  0x40   : > { %200 = vadd.xlane.f32.xlu1 %v195_v5  ;;  %198 = vadd.xlane.f32.xlu0 %v194_v6 }
  0x44   : > { %204 = vadd.xlane.f32.xlu1 %v197_v7  ;;  %202 = vadd.xlane.f32.xlu0 %v196_v8 }
  0xc1   : > { %v178_v11 = vpop.xlane.xlu1 %177  ;;  %v174_v12 = vpop.xlane.xlu0 %173 }
  0xc2   : > { %v183_v13 = vadd.f32 %v178_v11, %v171_v9  ;;  %v181_v14 = vadd.f32 %v174_v12, %v169_v10 }
  0xc4   : > { %188 = vst.msk [vmem:[#allocation2 + $0x10] sm:$0xff] %vm185_vm1, %v183_v13  ;;  %186 = vst.msk [vmem:[#allocation2] sm:$0xff] %vm185_vm1, %v181_v14 }
  0xc5   : > { %v180_v17 = vpop.xlane.xlu1 %179  ;;  %v176_v18 = vpop.xlane.xlu0 %175 }
  0xc6   : > { %v184_v19 = vadd.f32 %v180_v17, %v172_v15  ;;  %v182_v20 = vadd.f32 %v176_v18, %v170_v16 }
  0xc8   : > { %189 = vst.msk [vmem:[#allocation2 + $0x18] sm:$0xff] %vm185_vm1, %v184_v19  ;;  %187 = vst.msk [vmem:[#allocation2 + $0x8] sm:$0xff] %vm185_vm1, %v182_v20 }
  0xc9   : > { %v201_v23 = vpop.xlane.xlu1 %200  ;;  %v199_v24 = vpop.xlane.xlu0 %198 }
  0xca   : > { %v207_v25 = vadd.f32 %v201_v23, %v191_v21  ;;  %v206_v26 = vadd.f32 %v199_v24, %v190_v22 }
  0xcc   : > { %211 = vst.msk [vmem:[#allocation3 + $0x8] sm:$0xff] %vm185_vm1, %v207_v25  ;;  %210 = vst.msk [vmem:[#allocation3] sm:$0xff] %vm185_vm1, %v206_v26  ;;  %217 = sbr.rel (%p367_p7) target bundleno = 358 (0x166), region = 36 }
  0xcd   : > { %v205_v29 = vpop.xlane.xlu1 %204  ;;  %v203_v30 = vpop.xlane.xlu0 %202 }
  0xce   : > { %v209_v31 = vadd.f32 %v205_v29, %v193_v27  ;;  %v208_v32 = vadd.f32 %v203_v30, %v192_v28 }
  0xd0   : > { %213 = vst.msk [vmem:[#allocation3 + $0x18] sm:$0xff] %vm185_vm1, %v209_v31  ;;  %212 = vst.msk [vmem:[#allocation3 + $0x10] sm:$0xff] %vm185_vm1, %v208_v32 }
  0xd1   : > { %v220_v33 = vld [vmem:[#allocation2 + $0x10] sm:$0xff]  ;;  %v218_v35 = vld [vmem:[#allocation2] sm:$0xff]  ;;  %v221_v40 = vld [vmem:[#allocation2 + $0x18] sm:$0xff]  ;;  %vm270_vm2 = vcmask 15360  }
  0xd2   : > { %v224_v36 = vmul.f32 0.00390625, %v220_v33  ;;  %v222_v38 = vmul.f32 0.00390625, %v218_v35  ;;  %v225_v43 = vmul.f32 0.00390625, %v221_v40  ;;  %v219_v45 = vld [vmem:[#allocation2 + $0x8] sm:$0xff] }
  0xd3   : > { %v226_v39 = vld [vmem:[#allocation3] sm:$0xff]  ;;  %v227_v46 = vld [vmem:[#allocation3 + $0x8] sm:$0xff]  ;;  %v223_v49 = vmul.f32 0.00390625, %v219_v45 }
  0xd4   : > { %v230_v42 = vmul.f32 0.00390625, %v226_v39  ;;  %v236_v47 = vmul.f32 %v224_v36, %v224_v36  ;;  %v234_v48 = vmul.f32 %v222_v38, %v222_v38  ;;  %v231_v50 = vmul.f32 0.00390625, %v227_v46 }
  0xd5   : > { %v237_v51 = vmul.f32 %v225_v43, %v225_v43  ;;  %v235_v54 = vmul.f32 %v223_v49, %v223_v49 }
  0xd6   : > { %v238_v53 = vsub.f32 %v230_v42, %v234_v48 }
  0xd7   : > { %v228_v34 = vld [vmem:[#allocation3 + $0x10] sm:$0xff]  ;;  %v229_v41 = vld [vmem:[#allocation3 + $0x18] sm:$0xff]  ;;  %v239_v58 = vsub.f32 %v231_v50, %v235_v54 }
  0xd8   : > { %v232_v37 = vmul.f32 0.00390625, %v228_v34  ;;  %v233_v44 = vmul.f32 0.00390625, %v229_v41  ;;  %v242_v57 = vadd.f32 1e-05, %v238_v53 }
  0xd9   : > { %v243_v60 = vadd.f32 1e-05, %v239_v58 }
  0xda   : > { %v240_v52 = vsub.f32 %v232_v37, %v236_v47  ;;  %v241_v55 = vsub.f32 %v233_v44, %v237_v51 }
  0xdc   : > { %v244_v56 = vadd.f32 1e-05, %v240_v52  ;;  %v245_v59 = vadd.f32 1e-05, %v241_v55 }
  0xde   : > { %447 = vrsqrt.f32 %v244_v56 }
  0xdf   : > { %449 = vrsqrt.f32 %v242_v57 }
  0xe0   : > { %451 = vrsqrt.f32 %v245_v59 }
  0xe1   : > { %453 = vrsqrt.f32 %v243_v60 }
  0xeb   : > { %v448_v61 = vpop.eup %447 }
  0xec   : > { %v450_v62 = vpop.eup %449  ;;  %258 = vrot.lane.b32.xlu1 %v448_v61, %s556_s9 }
  0xed   : > { %v452_v63 = vpop.eup %451  ;;  %254 = vrot.lane.b32.xlu0 %v450_v62, %s556_s9 }
  0xee   : > { %v454_v0 = vpop.eup %453 }
  0xf0   : > { %260 = vrot.lane.b32.xlu1 %v452_v63, %s556_s9 }
  0xf1   : > { %256 = vrot.lane.b32.xlu0 %v454_v0, %s556_s9 }
 0x15e   : > { %v259_v1 = vpop.permute.xlu1 %258 }
 0x15f   : > { %v268_v2 = vsel %vm185_vm1, %v224_v36, %v259_v1  ;;  %v255_v3 = vpop.permute.xlu0 %254 }
 0x160   : > { %273 = vst.msk [vmem:[%s666_s3 + $0x10] sm:$0xff] %vm270_vm2, %v268_v2  ;;  %v266_v4 = vsel %vm185_vm1, %v222_v38, %v255_v3 }
 0x161   : > { %271 = vst.msk [vmem:[%s666_s3] sm:$0xff] %vm270_vm2, %v266_v4 }
 0x162   : > { %v261_v5 = vpop.permute.xlu1 %260 }
 0x163   : > { %v269_v6 = vsel %vm185_vm1, %v225_v43, %v261_v5  ;;  %v257_v7 = vpop.permute.xlu0 %256 }
 0x164   : > { %274 = vst.msk [vmem:[%s666_s3 + $0x18] sm:$0xff] %vm270_vm2, %v269_v6  ;;  %v267_v8 = vsel %vm185_vm1, %v223_v49, %v257_v7 }
 0x165   : > { %272 = vst.msk [vmem:[%s666_s3 + $0x8] sm:$0xff] %vm270_vm2, %v267_v8 }
 0x166 PF: > { %s14_s13 = sadd.s32 1, %s549_s13   ;;  %s715_s6 = smov %s525_s7 }
 0x167   : > { %p11_p11 = scmp.ge.s32.totalorder %s14_s13, 6   ;;  %s716_s7 = smov %s529_s8 }
 0x168   : > { %s717_s8 = smov %s634_s26  ;;  %s718_s9 = smov %s541_s11 }
 0x169   : > { %s719_s10 = smov %s545_s12  ;;  %s720_s11 = smov %s723_s15 }
 0x16a   : > { %s721_s12 = smov %s727_s16  ;;  %13 = sbr.rel (!%p11_p11) target bundleno = 5 (0x5), region = 72 }
 0x16f   :  { %296 = vsyncpa [#allocation5], 1 }
 0x170   :  { %298 = vsyncpa [#allocation5 + $0x1], 1 }

</bundles_post_ra>
